<compile_context>
chip_gen: v7x
topology: tpu7x:2x2x1
jax: 0.10.0
libtpu: 0.0.40
codegen_flags: <defaults>
</compile_context>

<pallas_src>
import functools

import jax
import jax.numpy as jnp
from jax import lax
from jax.experimental import pallas as pl
from jax.experimental.pallas import tpu as pltpu


def _round_up(x, m):
    return ((x + m - 1) // m) * m


def _dice_loss_kernel(logits_ref, target_ref, *rest,
                      alpha, gamma, L, L_tile, has_mask, need_den, padded):
    # Unpack refs: inputs..., outputs..., scratch...
    idx = 0
    if has_mask:
        mask_ref = rest[idx]; idx += 1
    num_ref = rest[idx]; idx += 1
    if need_den:
        den_ref = rest[idx]; idx += 1
    acc_num = rest[idx]; idx += 1
    if need_den:
        acc_den = rest[idx]; idx += 1

    l = pl.program_id(1)
    last_l = pl.num_programs(1) - 1

    @pl.when(l == 0)
    def _init():
        acc_num[...] = jnp.zeros_like(acc_num)
        if need_den:
            acc_den[...] = jnp.zeros_like(acc_den)

    logits = logits_ref[...].astype(jnp.float32)      # (Bt, C, Lt)
    target = target_ref[...]                          # (Bt, Lt) int32

    # --- fused softmax + channel gather (never materialize prob over all C) ---
    m = jnp.max(logits, axis=1, keepdims=True)        # (Bt, 1, Lt)
    e = jnp.exp(logits - m)                           # (Bt, C, Lt)
    sum_e = jnp.sum(e, axis=1)                        # (Bt, Lt)
    # TPU has no in-vreg dynamic gather; select the target channel via iota-compare + reduce.
    ch = lax.broadcasted_iota(jnp.int32, e.shape, 1)
    e_t = jnp.sum(jnp.where(ch == target[:, None, :], e, 0.0), axis=1)   # (Bt, Lt)
    prob = e_t / sum_e                                # (Bt, Lt) -- single divide at (B, L)

    # --- dice loss elementwise: (1 - p)^alpha * p ---
    one_minus = 1.0 - prob
    a = float(alpha)
    if a == 0.0:
        pw = jnp.ones_like(prob)
    elif a == 1.0:
        pw = one_minus
    elif float(a).is_integer() and 1 < int(a) <= 4:
        pw = one_minus
        for _ in range(int(a) - 1):
            pw = pw * one_minus
    else:
        pw = jnp.power(one_minus, a)
    pwf = pw * prob
    loss = 1.0 - (2.0 * pwf + gamma) / (pwf + 1.0 + gamma)   # (Bt, Lt)

    # --- weighting: user mask (already zero-padded by the wrapper) or padding-validity mask ---
    if has_mask:
        w = mask_ref[...].astype(jnp.float32)
    elif padded:
        pos = l * L_tile + lax.broadcasted_iota(jnp.int32, loss.shape, 1)
        w = (pos < L).astype(jnp.float32)
    else:
        w = None

    # --- per-lane accumulation (pure VPU); cross-lane reduce deferred to the last step ---
    if w is not None:
        acc_num[...] += loss * w
    else:
        acc_num[...] += loss
    if need_den:
        acc_den[...] += w   # need_den implies has_mask, so w is the real mask

    @pl.when(l == last_l)
    def _finalize():
        num_ref[...] = jnp.sum(acc_num[...], axis=-1, keepdims=True)
        if need_den:
            den_ref[...] = jnp.sum(acc_den[...], axis=-1, keepdims=True)


def dice_loss(output, target, mask=None, *, alpha=0.6, gamma=0.0, reduction='mean',
              l_tile=1024):
    """Pallas implementation of DiceLoss.forward.

    output: (B, C, d1, d2, ...) float (any float dtype; no HBM upcast)
    target: (B, d1, d2, ...) int
    mask:   optional (B, d1, d2, ...) float
    """
    if reduction not in ('sum', 'mean'):
        # TODO(synk): reduction == 'none' would need a (B, L) per-element output map; not wired up.
        raise ValueError("This Pallas kernel supports reduction in {'sum','mean'}.")

    B, C = output.shape[0], output.shape[1]
    logits = jnp.reshape(output, (B, C, -1))          # keep original dtype (cast inside kernel)
    L = logits.shape[-1]
    tgt = jnp.reshape(target, (B, -1)).astype(jnp.int32)

    has_mask = mask is not None
    need_den = has_mask and reduction == 'mean'
    if has_mask:
        msk = jnp.reshape(mask, (B, -1))

    # --- tiling over L (reduction axis) ---
    L_tile = min(int(l_tile), _round_up(L, 128))
    L_pad = _round_up(L, L_tile)
    padded = L_pad != L
    if padded:
        # Deterministic zero-padding (softmax of zeros is finite); padded positions are
        # excluded inside the kernel (mask is zero-padded; no-mask path uses an iota check).
        logits = jnp.pad(logits, ((0, 0), (0, 0), (0, L_pad - L)))
        tgt = jnp.pad(tgt, ((0, 0), (0, L_pad - L)))
        if has_mask:
            msk = jnp.pad(msk, ((0, 0), (0, L_pad - L)))

    # --- tiling over batch (parallel axis; gives megacore sharding on v7x) ---
    if B % 8 == 0 and B > 8:
        B_tile = 8
    else:
        B_tile = B
    nb = B // B_tile
    nl = L_pad // L_tile

    in_specs = [
        pl.BlockSpec((B_tile, C, L_tile), lambda b, l: (b, 0, l)),
        pl.BlockSpec((B_tile, L_tile), lambda b, l: (b, l)),
    ]
    args = [logits, tgt]
    if has_mask:
        in_specs.append(pl.BlockSpec((B_tile, L_tile), lambda b, l: (b, l)))
        args.append(msk)

    out_shapes = [jax.ShapeDtypeStruct((B, 1), jnp.float32)]
    out_specs = [pl.BlockSpec((B_tile, 1), lambda b, l: (b, 0))]
    if need_den:
        out_shapes.append(jax.ShapeDtypeStruct((B, 1), jnp.float32))
        out_specs.append(pl.BlockSpec((B_tile, 1), lambda b, l: (b, 0)))

    scratch_shapes = [pltpu.VMEM((B_tile, L_tile), jnp.float32)]
    if need_den:
        scratch_shapes.append(pltpu.VMEM((B_tile, L_tile), jnp.float32))

    kernel = functools.partial(
        _dice_loss_kernel,
        alpha=float(alpha),
        gamma=float(gamma),
        L=L,
        L_tile=L_tile,
        has_mask=has_mask,
        need_den=need_den,
        padded=padded,
    )

    outs = pl.pallas_call(
        kernel,
        out_shape=tuple(out_shapes),
        grid_spec=pltpu.PrefetchScalarGridSpec(
            num_scalar_prefetch=0,
            grid=(nb, nl),
            in_specs=in_specs,
            out_specs=tuple(out_specs),
            scratch_shapes=tuple(scratch_shapes),
        ),
        compiler_params=pltpu.CompilerParams(
            dimension_semantics=("parallel", "arbitrary")),
    )(*args)

    num = outs[0][:, 0]                                # (B,) per-batch sum of (masked) loss
    if reduction == 'sum':
        return jnp.sum(num)
    # reduction == 'mean'
    if has_mask:
        den = outs[1][:, 0]                            # (B,) per-batch sum of mask
        return jnp.mean(num / den)
    return jnp.sum(num) / (B * L)


def _dice_loss_ref(output, target, mask=None, *, alpha=0.6, gamma=0.0, reduction='mean'):
    """Pure-JAX reference matching the PyTorch module."""
    B, C = output.shape[0], output.shape[1]
    logits = jnp.reshape(output, (B, C, -1)).astype(jnp.float32)
    tgt = jnp.reshape(target, (B, -1)).astype(jnp.int32)
    prob_all = jax.nn.softmax(logits, axis=1)
    prob = jnp.take_along_axis(prob_all, tgt[:, None, :], axis=1)[:, 0, :]
    pwf = (1.0 - prob) ** alpha * prob
    loss = 1.0 - (2.0 * pwf + gamma) / (pwf + 1.0 + gamma)
    if reduction == 'sum':
        if mask is not None:
            loss = loss * jnp.reshape(mask, (B, -1)).astype(jnp.float32)
        return jnp.sum(loss)
    if mask is not None:
        msk = jnp.reshape(mask, (B, -1)).astype(jnp.float32)
        loss = jnp.sum(loss * msk, axis=-1) / jnp.sum(msk, axis=-1)
        return jnp.mean(loss)
    return jnp.mean(loss)


if __name__ == "__main__":
    key = jax.random.PRNGKey(0)
    keys = jax.random.split(key, 11)

    # ---- config 1: (B, C, H, W) = (2, 4, 8, 16), L = 128, single tile ----
    B, C, H, W = 2, 4, 8, 16
    logits = jax.random.normal(keys[0], (B, C, H, W), dtype=jnp.float32)
    target = jax.random.randint(keys[1], (B, H, W), 0, C, dtype=jnp.int32)
    mask = (jax.random.uniform(keys[2], (B, H, W)) > 0.3).astype(jnp.float32)

    loss = jax.block_until_ready(dice_loss(logits, target))
    ref = _dice_loss_ref(logits, target)
    assert jnp.allclose(loss, ref, atol=1e-5, rtol=1e-5), (loss, ref)

    loss_m = jax.block_until_ready(dice_loss(logits, target, mask))
    ref_m = _dice_loss_ref(logits, target, mask)
    assert jnp.allclose(loss_m, ref_m, atol=1e-5, rtol=1e-5), (loss_m, ref_m)

    loss_s = jax.block_until_ready(dice_loss(logits, target, mask, reduction='sum'))
    ref_s = _dice_loss_ref(logits, target, mask, reduction='sum')
    assert jnp.allclose(loss_s, ref_s, atol=1e-3, rtol=1e-5), (loss_s, ref_s)

    # ---- config 2: L = 200 (not a multiple of 128) -> exercises padding; alpha=1 special case ----
    B2, C2, L2 = 2, 3, 200
    lg2 = jax.random.normal(keys[3], (B2, C2, L2), dtype=jnp.float32)
    tg2 = jax.random.randint(keys[4], (B2, L2), 0, C2, dtype=jnp.int32)
    l2 = jax.block_until_ready(dice_loss(lg2, tg2, alpha=1.0, gamma=0.5))
    r2 = _dice_loss_ref(lg2, tg2, alpha=1.0, gamma=0.5)
    assert jnp.allclose(l2, r2, atol=1e-5, rtol=1e-5), (l2, r2)

    # ---- config 3: bf16 logits, L = 2048 with l_tile=512 -> multi-block grid over L ----
    B3, C3, L3 = 2, 4, 2048
    lg3 = jax.random.normal(keys[5], (B3, C3, L3), dtype=jnp.bfloat16)
    tg3 = jax.random.randint(keys[6], (B3, L3), 0, C3, dtype=jnp.int32)
    msk3 = (jax.random.uniform(keys[7], (B3, L3)) > 0.5).astype(jnp.float32)
    l3 = jax.block_until_ready(dice_loss(lg3, tg3, msk3, reduction='sum', l_tile=512))
    r3 = _dice_loss_ref(lg3, tg3, msk3, reduction='sum')
    assert jnp.allclose(l3, r3, atol=1e-2, rtol=1e-4), (l3, r3)

    # ---- config 4: B = 16 -> B_tile = 8, two batch blocks (parallel axis) ----
    B4, C4, L4 = 16, 4, 256
    lg4 = jax.random.normal(keys[8], (B4, C4, L4), dtype=jnp.float32)
    tg4 = jax.random.randint(keys[9], (B4, L4), 0, C4, dtype=jnp.int32)
    l4 = jax.block_until_ready(dice_loss(lg4, tg4))
    r4 = _dice_loss_ref(lg4, tg4)
    assert jnp.allclose(l4, r4, atol=1e-5, rtol=1e-5), (l4, r4)

    print("KERNEL_OK")
</pallas_src>

<mosaic_0001>
module attributes {stable_mosaic.version = 11 : i64} {
  func.func @_dice_loss_kernel(%arg0: i32, %arg1: i32, %arg2: memref<2x4x128xf32, #tpu.memory_space<vmem>>, %arg3: memref<2x128xi32, #tpu.memory_space<vmem>>, %arg4: memref<2x1xf32, #tpu.memory_space<vmem>>, %arg5: memref<2x128xf32, #tpu.memory_space<vmem>>) attributes {dimension_semantics = [#tpu.dimension_semantics<parallel>, #tpu.dimension_semantics<arbitrary>], iteration_bounds = array<i64: 1, 1>, scalar_prefetch = 0 : i64, scratch_operands = 1 : i64, tpu.core_type = #tpu.core_type<tc>, window_params = [{transform_indices = @transform_0, window_bounds = array<i64: 2, 4, 128>}, {transform_indices = @transform_1, window_bounds = array<i64: 2, 128>}, {transform_indices = @transform_2, window_bounds = array<i64: 2, 1>}]} {
    %c0_i32 = arith.constant 0 : i32
    %0 = arith.cmpi eq, %arg1, %c0_i32 : i32
    %1 = arith.extui %0 : i1 to i32
    %c0_i32_0 = arith.constant 0 : i32
    %2 = arith.cmpi ne, %1, %c0_i32_0 : i32
    scf.if %2 {
      %cst_21 = arith.constant 0.000000e+00 : f32
      %41 = vector.broadcast %cst_21 : f32 to vector<2x128xf32>
      %c0_22 = arith.constant 0 : index
      %c0_23 = arith.constant 0 : index
      %42 = vector.load %arg5[%c0_22, %c0_23] : memref<2x128xf32, #tpu.memory_space<vmem>>, vector<2x128xf32>
      tpu.vector_store %arg5[%c0_22, %c0_23], %41 {strides = array<i32>} : memref<2x128xf32, #tpu.memory_space<vmem>>, vector<2x128xf32>,
    } else {
    }
    %c0 = arith.constant 0 : index
    %c0_1 = arith.constant 0 : index
    %c0_2 = arith.constant 0 : index
    %3 = vector.load %arg2[%c0, %c0_1, %c0_2] : memref<2x4x128xf32, #tpu.memory_space<vmem>>, vector<2x4x128xf32>
    %c0_3 = arith.constant 0 : index
    %c0_4 = arith.constant 0 : index
    %4 = vector.load %arg3[%c0_3, %c0_4] : memref<2x128xi32, #tpu.memory_space<vmem>>, vector<2x128xi32>
    %cst = arith.constant dense<0xFF800000> : vector<2x128xf32>
    %5 = vector.multi_reduction <maximumf>, %3, %cst [1] : vector<2x4x128xf32> to vector<2x128xf32>
    %6 = vector.shape_cast %5 : vector<2x128xf32> to vector<2x1x128xf32>
    %7 = vector.broadcast %6 : vector<2x1x128xf32> to vector<2x4x128xf32>
    %8 = arith.subf %3, %7 : vector<2x4x128xf32>
    %9 = math.exp %8 : vector<2x4x128xf32>
    %cst_5 = arith.constant dense<0.000000e+00> : vector<2x128xf32>
    %10 = vector.multi_reduction <add>, %9, %cst_5 [1] : vector<2x4x128xf32> to vector<2x128xf32>
    %11 = tpu.iota {dimensions = array<i32: 1>} : vector<2x4x128xi32>
    %12 = vector.shape_cast %4 : vector<2x128xi32> to vector<2x1x128xi32>
    %13 = vector.broadcast %12 : vector<2x1x128xi32> to vector<2x4x128xi32>
    %14 = arith.cmpi eq, %11, %13 : vector<2x4x128xi32>
    %cst_6 = arith.constant 0.000000e+00 : f32
    %15 = vector.broadcast %cst_6 : f32 to vector<2x4x128xf32>
    %16 = arith.select %14, %9, %15 : vector<2x4x128xi1>, vector<2x4x128xf32>
    %cst_7 = arith.constant dense<0.000000e+00> : vector<2x128xf32>
    %17 = vector.multi_reduction <add>, %16, %cst_7 [1] : vector<2x4x128xf32> to vector<2x128xf32>
    %18 = arith.divf %17, %10 : vector<2x128xf32>
    %cst_8 = arith.constant 1.000000e+00 : f32
    %19 = vector.broadcast %cst_8 : f32 to vector<2x128xf32>
    %20 = arith.subf %19, %18 : vector<2x128xf32>
    %cst_9 = arith.constant 6.000000e-01 : f32
    %21 = vector.broadcast %cst_9 : f32 to vector<2x128xf32>
    %22 = math.powf %20, %21 : vector<2x128xf32>
    %23 = arith.mulf %22, %18 : vector<2x128xf32>
    %cst_10 = arith.constant 2.000000e+00 : f32
    %24 = vector.broadcast %cst_10 : f32 to vector<2x128xf32>
    %25 = arith.mulf %24, %23 : vector<2x128xf32>
    %cst_11 = arith.constant 0.000000e+00 : f32
    %26 = vector.broadcast %cst_11 : f32 to vector<2x128xf32>
    %27 = arith.addf %25, %26 : vector<2x128xf32>
    %cst_12 = arith.constant 1.000000e+00 : f32
    %28 = vector.broadcast %cst_12 : f32 to vector<2x128xf32>
    %29 = arith.addf %23, %28 : vector<2x128xf32>
    %cst_13 = arith.constant 0.000000e+00 : f32
    %30 = vector.broadcast %cst_13 : f32 to vector<2x128xf32>
    %31 = arith.addf %29, %30 : vector<2x128xf32>
    %32 = arith.divf %27, %31 : vector<2x128xf32>
    %cst_14 = arith.constant 1.000000e+00 : f32
    %33 = vector.broadcast %cst_14 : f32 to vector<2x128xf32>
    %34 = arith.subf %33, %32 : vector<2x128xf32>
    %c0_15 = arith.constant 0 : index
    %c0_16 = arith.constant 0 : index
    %35 = vector.load %arg5[%c0_15, %c0_16] : memref<2x128xf32, #tpu.memory_space<vmem>>, vector<2x128xf32>
    %36 = arith.addf %35, %34 : vector<2x128xf32>
    %c0_17 = arith.constant 0 : index
    %c0_18 = arith.constant 0 : index
    %37 = vector.load %arg5[%c0_17, %c0_18] : memref<2x128xf32, #tpu.memory_space<vmem>>, vector<2x128xf32>
    tpu.vector_store %arg5[%c0_17, %c0_18], %36 {strides = array<i32>} : memref<2x128xf32, #tpu.memory_space<vmem>>, vector<2x128xf32>,
    %c0_i32_19 = arith.constant 0 : i32
    %38 = arith.cmpi eq, %arg1, %c0_i32_19 : i32
    %39 = arith.extui %38 : i1 to i32
    %c0_i32_20 = arith.constant 0 : i32
    %40 = arith.cmpi ne, %39, %c0_i32_20 : i32
    scf.if %40 {
      %c0_21 = arith.constant 0 : index
      %c0_22 = arith.constant 0 : index
      %41 = vector.load %arg5[%c0_21, %c0_22] : memref<2x128xf32, #tpu.memory_space<vmem>>, vector<2x128xf32>
      %cst_23 = arith.constant dense<0.000000e+00> : vector<2xf32>
      %42 = vector.multi_reduction <add>, %41, %cst_23 [1] : vector<2x128xf32> to vector<2xf32>
      %43 = vector.shape_cast %42 : vector<2xf32> to vector<2x1xf32>
      %c0_24 = arith.constant 0 : index
      %c0_25 = arith.constant 0 : index
      %44 = vector.load %arg4[%c0_24, %c0_25] : memref<2x1xf32, #tpu.memory_space<vmem>>, vector<2x1xf32>
      tpu.vector_store %arg4[%c0_24, %c0_25], %43 {strides = array<i32>} : memref<2x1xf32, #tpu.memory_space<vmem>>, vector<2x1xf32>,
    } else {
    }
    return
  }
  func.func @transform_0(%arg0: i32, %arg1: i32) -> (i32, i32, i32) {
    %c0_i32 = arith.constant 0 : i32
    %c0_i32_0 = arith.constant 0 : i32
    return %arg0, %c0_i32, %arg1 : i32, i32, i32
  }
  func.func @transform_1(%arg0: i32, %arg1: i32) -> (i32, i32) {
    %c0_i32 = arith.constant 0 : i32
    return %arg0, %arg1 : i32, i32
  }
  func.func @transform_2(%arg0: i32, %arg1: i32) -> (i32, i32) {
    %c0_i32 = arith.constant 0 : i32
    %c0_i32_0 = arith.constant 0 : i32
    return %arg0, %c0_i32 : i32, i32
  }
}

</mosaic_0001>

<bundles_post_ra>
// kernel: tpu_custom_call.1
= control target key start
LH: loop header
LB: loop body
LE: loop exit
PB: predicated region body
PF: predicated region fallthrough
CT: control target
= control target key end

     0   :  { %7 = vsyncpa [#allocation4], 0  ;;  %s267_s9 = smov [#allocation3]   ;;  %s311_s0 = inlined_call_operand.hbm [shape: f32[2,4,128], index: 0, kind: input, shape index: {}]   ;;  %s312_s1 = inlined_call_operand.vmem [shape: s32[2,128], index: 1, kind: input, shape index: {}]   ;;  %s313_s2 = inlined_call_operand.vmem [shape: f32[2,1], index: 2, kind: output, shape index: {}]  }
   0x1   :  { %s13_s10 = sshll.u32 %s267_s9, 4  ;;  %s243_s13 = scalar_lea.hbm %s311_s0, 128  ;;  %s14_s10 = int_to_ptr.vmem [resolvable:$true] %s13_s10 }
   0x2   :  { %p244_p0 = scmp.ne.s32.totalorder %s311_s0, %s243_s13  ;;  %p247_p1 = scmp.lt.u32.totalorder %s243_s13, %s311_s0 }
   0x4   :  { %p249_p2 = pnand %p247_p1, %p244_p0 }
   0x6   :  { %252 = shalt.err (!%p249_p2)
}
   0x7   :  { %s253_s18 = scalar_lea.vmem %s14_s10, 128  ;;  %p258_p4 = scmp.lt.s32.totalorder %s14_s10, %s14_s10 }
   0x8   :  { %p254_p3 = scmp.ne.s32.totalorder %s14_s10, %s253_s18  ;;  %p259_p5 = scmp.lt.s32.totalorder %s253_s18, %s253_s18 }
   0xa   :  { %p260_p6 = por %p259_p5, %p258_p4 }
   0xc   :  { %p261_p7 = pnand %p260_p6, %p254_p3 }
   0xe   :  { %264 = shalt.err (!%p261_p7)
}
   0xf   :  { %s268_s19 = smov 64   ;;  %s269_s20 = smov 4  }
  0x10   :  { %19 = dma.hbm_to_vmem [thread:$0]  %s311_s0, 128, %s14_s10, [#allocation4], %s268_s19, %s268_s19, %s269_s20  }
  0x11   :  { %265 = dma.done.wait [#allocation4], 128  }
  0x12   :  { %266 = vsyncadd [#allocation4], 4294967168  ;;  %v270_v0 = vmov 0.0   ;;  %vm33_vm0 = vcmask 1043456   ;;  %v30_v1 = vld [vmem:[#allocation3] sm:$0xf]  ;;  %v68_v11 = vlaneseq }
  0x13   :  { %29 = vst [vmem:[#allocation2] sm:$0x3] %v270_v0  ;;  %v31_v2 = vld [vmem:[#allocation3 + $0x4] sm:$0xf]  ;;  %v34_v3 = vsel %vm33_vm0, %v30_v1, -inf  ;;  %vm145_vm13 = vcmask 1041409  }
  0x14   :  { %v41_v4 = vsel %vm33_vm0, %v31_v2, -inf  ;;  %v35_v5 = vrot.slane %v34_v3, 4  ;;  %v271_v12 = vmov 1966171168   ;;  %v69_v18 = vshrl.u32 %v68_v11, 7 }
  0x15   :  { %v42_v6 = vrot.slane %v41_v4, 4  ;;  %v79_v13 = vunpack.c.l.s4 %v271_v12  ;;  %v165_v20 = vld.sshfl [vmem:[%s312_s1] sm:$0x11 pattern:$0x75316420]  ;;  %vm154_vm14 = vcmask 1041408  }
  0x16   :  { %v36_v7 = vmax.f32 %v34_v3, %v35_v5  ;;  %v77_v26 = vcombine.high %v165_v20, %v165_v20  ;;  %v94_v30 = vsub.s32 0, %v69_v18  ;;  %vm158_vm15 = vcmask 1024  }
  0x17   :  { %v43_v8 = vmax.f32 %v41_v4, %v42_v6  ;;  %v80_v19 = vunpack.c.0.s8 %v79_v13 }
  0x18   :  { %v37_v9 = vrot.slane %v36_v7, 2 }
  0x19   :  { %v44_v10 = vrot.slane %v43_v8, 2  ;;  %v83_v25 = vsub.s32 %v80_v19, %v69_v18 }
  0x1a   :  { %v38_v14 = vmax.f32 %v36_v7, %v37_v9 }
  0x1b   :  { %v45_v15 = vmax.f32 %v43_v8, %v44_v10  ;;  %v84_v29 = vrot.slane %v165_v20, %v83_v25  ;;  %v91_v31 = vrot.slane %v77_v26, %v83_v25 }
  0x1c   :  { %v39_v16 = vrot.slane %v38_v14, 1 }
  0x1d   :  { %v46_v17 = vrot.slane %v45_v15, 1  ;;  %v95_v32 = vrot.slane %v84_v29, %v94_v30  ;;  %v99_v33 = vrot.slane %v91_v31, %v94_v30 }
  0x1e   :  { %v40_v21 = vmax.f32 %v38_v14, %v39_v16 }
  0x1f   :  { %v47_v22 = vmax.f32 %v45_v15, %v46_v17  ;;  %vm100_vm1 = vcmp.eq.s32.totalorder %v69_v18, %v95_v32  ;;  %vm101_vm2 = vcmp.eq.s32.totalorder %v69_v18, %v99_v33 }
  0x20   :  { %v48_v23 = vsub.f32 %v30_v1, %v40_v21 }
  0x21   :  { %v49_v24 = vsub.f32 %v31_v2, %v47_v22 }
  0x22   :  { %v50_v27 = vmul.f32 1.442695, %v48_v23 }
  0x23   :  { %v52_v28 = vmul.f32 1.442695, %v49_v24 }
  0x24   :  { %223 = vpow2.f32 %v50_v27 }
  0x25   :  { %225 = vpow2.f32 %v52_v28 }
  0x2e   :  { %v224_v34 = vpop.eup %223 }
  0x2f   :  { %v226_v35 = vpop.eup %225  ;;  %v54_v36 = vsel %vm33_vm0, %v224_v34, 0.0  ;;  %v102_v37 = vsel %vm100_vm1, %v224_v34, 0.0 }
  0x30   :  { %v55_v38 = vrot.slane %v54_v36, 4  ;;  %v61_v39 = vsel %vm33_vm0, %v226_v35, 0.0  ;;  %v103_v40 = vsel %vm101_vm2, %v226_v35, 0.0  ;;  %v104_v41 = vsel %vm33_vm0, %v102_v37, 0.0 }
  0x31   :  { %v62_v42 = vrot.slane %v61_v39, 4  ;;  %v105_v43 = vrot.slane %v104_v41, 4  ;;  %v111_v44 = vsel %vm33_vm0, %v103_v40, 0.0 }
  0x32   :  { %v56_v45 = vadd.f32 %v55_v38, %v54_v36  ;;  %v112_v46 = vrot.slane %v111_v44, 4  ;;  %v142_v38 = vld [vmem:[#allocation2] sm:$0x3] }
  0x33   :  { %v63_v47 = vadd.f32 %v62_v42, %v61_v39  ;;  %v106_v48 = vadd.f32 %v105_v43, %v104_v41 }
  0x34   :  { %v57_v49 = vrot.slane %v56_v45, 2  ;;  %v113_v50 = vadd.f32 %v112_v46, %v111_v44 }
  0x35   :  { %v64_v51 = vrot.slane %v63_v47, 2  ;;  %v107_v54 = vrot.slane %v106_v48, 2 }
  0x36   :  { %v58_v52 = vadd.f32 %v57_v49, %v56_v45  ;;  %v114_v56 = vrot.slane %v113_v50, 2 }
  0x37   :  { %v65_v53 = vadd.f32 %v64_v51, %v63_v47  ;;  %v108_v60 = vadd.f32 %v107_v54, %v106_v48 }
  0x38   :  { %v59_v55 = vrot.slane %v58_v52, 1  ;;  %v115_v61 = vadd.f32 %v114_v56, %v113_v50 }
  0x39   :  { %v66_v57 = vrot.slane %v65_v53, 1  ;;  %v109_v62 = vrot.slane %v108_v60, 1 }
  0x3a   :  { %v60_v58 = vadd.f32 %v59_v55, %v58_v52  ;;  %v116_v63 = vrot.slane %v115_v61, 1 }
  0x3b   :  { %v67_v59 = vadd.f32 %v66_v57, %v65_v53  ;;  %v110_v0 = vadd.f32 %v109_v62, %v108_v60 }
  0x3c   :  { %227 = vrcp.f32 %v60_v58  ;;  %v117_v1 = vadd.f32 %v116_v63, %v115_v61 }
  0x3d   :  { %229 = vrcp.f32 %v67_v59 }
  0x46   :  { %v228_v2 = vpop.eup %227 }
  0x47   :  { %v230_v3 = vpop.eup %229  ;;  %v119_v4 = vmul.f32 %v228_v2, %v110_v0 }
  0x48   :  { %v121_v5 = vmul.f32 %v230_v3, %v117_v1 }
  0x49   :  { %v122_v6 = vsub.f32 1.0, %v119_v4 }
  0x4a   :  { %v123_v7 = vsub.f32 1.0, %v121_v5 }
  0x4b   :  { %v170_v8 = vand.u32 2147483647, %v122_v6  ;;  %vm174_vm3 = vcmp.lt.f32.partialorder %v122_v6, 0  ;;  %vm175_vm4 = vcmp.eq.f32.partialorder %v122_v6, 0  ;;  %vm187_vm8 = vcmp.ne.f32.partialorder %v122_v6, %v122_v6 }
  0x4c   :  { %v196_v9 = vand.u32 2147483647, %v123_v7  ;;  %vm200_vm5 = vcmp.lt.f32.partialorder %v123_v7, 0  ;;  %vm201_vm7 = vcmp.eq.f32.partialorder %v123_v7, 0  ;;  %vm176_vm10 = vcmp.eq.f32.partialorder %v122_v6, 1065353216 }
  0x4d   :  { %231 = vlog2.f32 %v170_v8  ;;  %vm179_vm6 = vcmp.eq.f32.partialorder %v170_v8, 2139095040  ;;  %vm213_vm11 = vcmp.ne.f32.partialorder %v123_v7, %v123_v7  ;;  %vm202_vm12 = vcmp.eq.f32.partialorder %v123_v7, 1065353216 }
  0x4e   :  { %233 = vlog2.f32 %v196_v9  ;;  %vm205_vm9 = vcmp.eq.f32.partialorder %v196_v9, 2139095040 }
  0x57   :  { %v232_v10 = vpop.eup %231 }
  0x58   :  { %v234_v11 = vpop.eup %233  ;;  %v172_v12 = vmul.f32 0.6, %v232_v10 }
  0x59   :  { %v198_v13 = vmul.f32 0.6, %v234_v11 }
  0x5a   :  { %235 = vpow2.f32 %v172_v12 }
  0x5b   :  { %237 = vpow2.f32 %v198_v13 }
  0x64   :  { %v236_v14 = vpop.eup %235 }
  0x65   :  { %v238_v15 = vpop.eup %237  ;;  %v180_v16 = vsel %vm174_vm3, 2143289344, %v236_v14 }
  0x66   :  { %v181_v17 = vsel %vm175_vm4, 0, %v180_v16  ;;  %v206_v18 = vsel %vm200_vm5, 2143289344, %v238_v15 }
  0x67   :  { %v186_v19 = vsel %vm179_vm6, 2139095040, %v181_v17  ;;  %v207_v20 = vsel %vm201_vm7, 0, %v206_v18 }
  0x68   :  { %v190_v21 = vsel %vm187_vm8, 2143289344, %v186_v19  ;;  %v212_v22 = vsel %vm205_vm9, 2139095040, %v207_v20 }
  0x69   :  { %v191_v23 = vsel %vm176_vm10, 1065353216, %v190_v21  ;;  %v216_v24 = vsel %vm213_vm11, 2143289344, %v212_v22 }
  0x6a   :  { %v217_v25 = vsel %vm202_vm12, 1065353216, %v216_v24  ;;  %v126_v26 = vmul.f32 %v191_v23, %v119_v4 }
  0x6b   :  { %v127_v27 = vmul.f32 %v217_v25, %v121_v5 }
  0x6c   :  { %v132_v28 = vadd.f32 1.0, %v126_v26  ;;  %v128_v30 = vmul.f32 2.0, %v126_v26 }
  0x6d   :  { %v133_v29 = vadd.f32 1.0, %v127_v27  ;;  %v129_v31 = vmul.f32 2.0, %v127_v27 }
  0x6e   :  { %239 = vrcp.f32 %v132_v28 }
  0x6f   :  { %241 = vrcp.f32 %v133_v29 }
  0x78   :  { %v240_v32 = vpop.eup %239 }
  0x79   :  { %v242_v33 = vpop.eup %241  ;;  %v137_v34 = vmul.f32 %v240_v32, %v128_v30 }
  0x7a   :  { %v139_v35 = vmul.f32 %v242_v33, %v129_v31 }
  0x7b   :  { %v140_v36 = vsub.f32 1.0, %v137_v34 }
  0x7c   :  { %v141_v37 = vsub.f32 1.0, %v139_v35 }
  0x7e   :  { %v146_v39 = vsel %vm145_vm13, %v141_v37, %v140_v36 }
  0x7f   :  { %v148_v40 = vadd.f32 %v146_v39, %v142_v38 }
  0x81   :  { %149 = vst [vmem:[#allocation2] sm:$0x3] %v148_v40 }
  0x88   :  { %v153_v41 = vld [vmem:[#allocation2] sm:$0x3] }
  0x89   :  { %v155_v42 = vsel %vm154_vm14, %v153_v41, 0.0 }
  0x8a   :  { %156 = vadd.xlane.f32.xlu0 %v155_v42 }
 0x117   :  { %v157_v43 = vpop.xlane.xlu0 %156 }
 0x118   :  { %159 = vst.msk [vmem:[%s313_s2] sm:$0x3] %vm158_vm15, %v157_v43 }
 0x119   :  { %164 = vsyncpa [#allocation4], 1 }

</bundles_post_ra>
